<compile_context>
chip_gen: v7x
topology: tpu7x:2x2x1
jax: 0.10.0
libtpu: 0.0.40
codegen_flags: <defaults>
</compile_context>

<pallas_src>
import functools
import math

import jax
import jax.numpy as jnp
from jax.experimental import pallas as pl
from jax.experimental.pallas import tpu as pltpu


def _round_up(n: int, m: int) -> int:
    return ((n + m - 1) // m) * m


def _chip_info():
    """(per-core VMEM capacity bytes, #TensorCores sharing the grid)."""
    cap = 64 * 1024 * 1024        # conservative default = v7x per-TC VMEM
    cap_known = False
    num_tc = 1
    try:
        info = pltpu.get_tpu_info()
        cap = int(info.vmem_capacity_bytes)
        cap_known = True
        for attr in ("num_cores", "core_count", "num_tensorcores"):
            v = getattr(info, attr, None)
            if isinstance(v, int) and v > 0:
                num_tc = v
                break
    except Exception:
        pass
    try:
        d = jax.devices()[0]
        for attr in ("num_cores", "core_count"):
            v = getattr(d, attr, None)
            if isinstance(v, int) and v > 0:
                num_tc = max(num_tc, v)
                break
    except Exception:
        pass
    # v7x: 64 MiB VMEM per TC and 2 TCs per chip (megacore).
    if cap_known and cap <= 64 * 1024 * 1024:
        num_tc = max(num_tc, 2)
    return cap, num_tc


def _vmem_limit_bytes(cap: int) -> int:
    """Scoped-VMEM limit to request from the compiler."""
    if cap >= 128 * 1024 * 1024:          # v5e / v6e: use the headroom
        return 100 * 1024 * 1024
    return int(cap * 0.75)                 # v7x (64 MiB/TC): stay conservative


def _choose_tile_rows(rows: int, dim: int, dtype, vmem_limit: int,
                      cap: int, num_tc: int, nbuf_in: int) -> int:
    """Row tile sized by target block bytes, capped by the VMEM budget."""
    itemsize = jnp.dtype(dtype).itemsize
    sub = max(8, 32 // itemsize)           # sublane packing: 8 f32 / 16 bf16 / 32 int8
    if rows <= sub:
        return rows                        # single full-array block

    row_bytes = dim * itemsize

    # Bytes-based target (~4 MiB input blocks): measured tiling sweeps plateau
    # at ~86% of HBM roofline for 1-4 MiB blocks; this also amortizes the
    # ~0.35us per-grid-step overhead for small dims.
    target_block_bytes = 4 * 1024 * 1024
    tile = max(sub, (target_block_bytes // row_bytes) // sub * sub)

    # VMEM cap: nbuf_in input buffers + 2 output buffers (itemsize each) plus
    # ~one f32-wide temporary live inside the body.
    bytes_per_row = dim * ((nbuf_in + 2) * itemsize + 4)
    budget_factor = 0.8 if cap >= 128 * 1024 * 1024 else 0.65
    budget = int(vmem_limit * budget_factor)
    budget_rows = max(sub, (budget // bytes_per_row) // sub * sub)

    tile = min(tile, budget_rows, _round_up(rows, sub))
    tile = max(sub, (tile // sub) * sub)

    # Megacore (v7x, 2 TCs): each core needs >=2 grid steps so its input DMA /
    # compute / output writeback actually overlap.  Single-TC chips: no split.
    if num_tc > 1:
        min_blocks = 2 * num_tc
        if pl.cdiv(rows, tile) < min_blocks and rows >= min_blocks * sub:
            tile = min(tile, max(sub, (rows // min_blocks) // sub * sub))
    return tile


def _make_in_spec(tile_rows: int, dim_p: int, buffer_count: int) -> pl.BlockSpec:
    idx_map = lambda i: (i, 0)
    if buffer_count > 2 and hasattr(pl, "Buffered"):
        try:
            return pl.BlockSpec((tile_rows, dim_p), idx_map,
                                pipeline_mode=pl.Buffered(buffer_count))
        except TypeError:
            pass
    return pl.BlockSpec((tile_rows, dim_p), idx_map)


def _rmsnorm_kernel(x_ref, w_ref, o_ref, *, eps: float, inv_dim: float):
    # x_ref: (tile_rows, dim_p) block; w_ref: (1, dim_p) f32 (VMEM-resident);
    # o_ref like x_ref.  Padded lanes of x/w are zero, so the sum is exact and
    # padded output lanes are zero.  inv_dim = 1 / true_dim.
    xf = x_ref[...].astype(jnp.float32)
    ss = jnp.sum(xf * xf, axis=-1, keepdims=True)          # XLU lane reduce (f32 acc)
    inv = jax.lax.rsqrt(ss * inv_dim + eps)                 # EUP
    # Re-read + re-cast (free VPU work) instead of keeping `xf` live across both uses.
    o_ref[...] = (x_ref[...].astype(jnp.float32) * inv * w_ref[...]).astype(o_ref.dtype)


def rmsnorm(x: jax.Array, weight: jax.Array, eps: float = 1e-6,
            tile_rows: int | None = None, donate_input: bool = False) -> jax.Array:
    """RMSNorm over the last axis of x, matching the PyTorch module.

    donate_input=True aliases the (flattened, possibly padded) input buffer to the
    output (input_output_aliases={0: 0}); only use it when x is not needed afterwards.
    """
    orig_shape = x.shape
    dim = orig_shape[-1]
    assert weight.shape == (dim,)

    rows = math.prod(orig_shape[:-1]) if len(orig_shape) > 1 else 1
    x2d = x.reshape(rows, dim)
    w2d = weight.astype(jnp.float32).reshape(1, dim)        # cast once, outside kernel

    # Lane-density guard: pad dim to a multiple of 128 so output stores are
    # unmasked full-lane vst's (largest measured store-path lever).
    dim_p = _round_up(dim, 128)
    if dim_p != dim:
        x2d = jnp.pad(x2d, ((0, 0), (0, dim_p - dim)))
        w2d = jnp.pad(w2d, ((0, 0), (0, dim_p - dim)))

    cap, num_tc = _chip_info()
    vmem_limit = _vmem_limit_bytes(cap)
    is_small_vmem = cap <= 64 * 1024 * 1024                 # v7x-class chip
    nbuf_in = 3 if is_small_vmem else 2                     # 3-deep input pipeline on v7x

    itemsize = jnp.dtype(x.dtype).itemsize
    sub = max(8, 32 // itemsize)
    if tile_rows is None:
        tile_rows = _choose_tile_rows(rows, dim_p, x.dtype, vmem_limit,
                                      cap, num_tc, nbuf_in)
    else:
        if rows <= sub:
            tile_rows = rows
        else:
            tile_rows = min(max(sub, _round_up(tile_rows, sub)), _round_up(rows, sub))

    grid_steps = pl.cdiv(rows, tile_rows)    # ragged last block handled by Pallas masking
    if grid_steps < 3:
        nbuf_in = 2                          # nothing to triple-buffer against

    extra = {}
    if donate_input:
        extra["input_output_aliases"] = {0: 0}

    out = pl.pallas_call(
        functools.partial(_rmsnorm_kernel, eps=float(eps), inv_dim=1.0 / float(dim)),
        out_shape=jax.ShapeDtypeStruct((rows, dim_p), x.dtype),
        grid_spec=pltpu.PrefetchScalarGridSpec(
            num_scalar_prefetch=0,
            grid=(grid_steps,),
            in_specs=[
                _make_in_spec(tile_rows, dim_p, nbuf_in),
                pl.BlockSpec((1, dim_p), lambda i: (0, 0)),   # resident weight block
            ],
            out_specs=pl.BlockSpec((tile_rows, dim_p), lambda i: (i, 0)),
        ),
        compiler_params=pltpu.CompilerParams(
            dimension_semantics=("parallel",),
            vmem_limit_bytes=vmem_limit,
        ),
        **extra,
    )(x2d, w2d)

    if dim_p != dim:
        out = out[:, :dim]
    return out.reshape(orig_shape)


def rmsnorm_ref(x, weight, eps=1e-6):
    xf = x.astype(jnp.float32)
    ms = jnp.mean(xf * xf, axis=-1, keepdims=True)
    return (xf * jax.lax.rsqrt(ms + eps) * weight.astype(jnp.float32)).astype(x.dtype)


if __name__ == "__main__":
    key = jax.random.PRNGKey(0)
    batch, seq, dim = 2, 8, 128
    x = jax.random.normal(key, (batch, seq, dim), dtype=jnp.float32)
    weight = jnp.ones((dim,), dtype=jnp.float32)   # PyTorch inits weight to ones.

    y = jax.block_until_ready(rmsnorm(x, weight, eps=1e-6))
    y_ref = rmsnorm_ref(x, weight, eps=1e-6)
    assert y.shape == x.shape and y.dtype == x.dtype
    assert jnp.allclose(y, y_ref, atol=1e-5, rtol=1e-5)

    # Ragged rows (21 rows, tile 16): exercises the masked last row block.
    x2 = jax.random.normal(jax.random.PRNGKey(1), (3, 7, 256), dtype=jnp.float32)
    w2 = jnp.ones((256,), dtype=jnp.float32)
    y2 = jax.block_until_ready(rmsnorm(x2, w2, eps=1e-6, tile_rows=16))
    assert jnp.allclose(y2, rmsnorm_ref(x2, w2), atol=1e-5, rtol=1e-5)

    # Non-lane-dense dim (96 < 128): exercises the pad-to-128 path with real weights.
    x3 = jax.random.normal(jax.random.PRNGKey(2), (2, 5, 96), dtype=jnp.float32)
    w3 = 1.0 + 0.1 * jax.random.normal(jax.random.PRNGKey(3), (96,), dtype=jnp.float32)
    y3 = jax.block_until_ready(rmsnorm(x3, w3, eps=1e-6))
    assert jnp.allclose(y3, rmsnorm_ref(x3, w3), atol=1e-5, rtol=1e-5)

    # bf16 path: f32 accumulation inside the kernel, cast back on store.
    x4 = jax.random.normal(jax.random.PRNGKey(4), (4, 8, 128), dtype=jnp.bfloat16)
    w4 = jnp.ones((128,), dtype=jnp.bfloat16)
    y4 = jax.block_until_ready(rmsnorm(x4, w4, eps=1e-6))
    assert jnp.allclose(y4.astype(jnp.float32), rmsnorm_ref(x4, w4).astype(jnp.float32),
                        atol=2e-2, rtol=2e-2)

    print("KERNEL_OK")
</pallas_src>

<mosaic_0001>
module attributes {stable_mosaic.version = 11 : i64} {
  func.func @_rmsnorm_kernel(%arg0: i32, %arg1: memref<16x128xf32, #tpu.memory_space<vmem>>, %arg2: memref<1x128xf32, #tpu.memory_space<vmem>>, %arg3: memref<16x128xf32, #tpu.memory_space<vmem>>) attributes {dimension_semantics = [#tpu.dimension_semantics<parallel>], iteration_bounds = array<i64: 1>, scalar_prefetch = 0 : i64, scratch_operands = 0 : i64, tpu.core_type = #tpu.core_type<tc>, window_params = [{transform_indices = @transform_0, window_bounds = array<i64: 16, 128>}, {pipeline_mode = #tpu.pipeline_mode<synchronous>, transform_indices = @transform_1, window_bounds = array<i64: 1, 128>}, {transform_indices = @transform_2, window_bounds = array<i64: 16, 128>}]} {
    %c0 = arith.constant 0 : index
    %c0_0 = arith.constant 0 : index
    %0 = vector.load %arg1[%c0, %c0_0] : memref<16x128xf32, #tpu.memory_space<vmem>>, vector<16x128xf32>
    %1 = arith.mulf %0, %0 : vector<16x128xf32>
    %cst = arith.constant dense<0.000000e+00> : vector<16xf32>
    %2 = vector.multi_reduction <add>, %1, %cst [1] : vector<16x128xf32> to vector<16xf32>
    %3 = vector.shape_cast %2 : vector<16xf32> to vector<16x1xf32>
    %cst_1 = arith.constant 7.812500e-03 : f32
    %4 = vector.broadcast %cst_1 : f32 to vector<16x1xf32>
    %5 = arith.mulf %3, %4 : vector<16x1xf32>
    %cst_2 = arith.constant 9.99999997E-7 : f32
    %6 = vector.broadcast %cst_2 : f32 to vector<16x1xf32>
    %7 = arith.addf %5, %6 : vector<16x1xf32>
    %8 = math.rsqrt %7 : vector<16x1xf32>
    %c0_3 = arith.constant 0 : index
    %c0_4 = arith.constant 0 : index
    %9 = vector.load %arg1[%c0_3, %c0_4] : memref<16x128xf32, #tpu.memory_space<vmem>>, vector<16x128xf32>
    %10 = vector.broadcast %8 : vector<16x1xf32> to vector<16x128xf32>
    %11 = arith.mulf %9, %10 : vector<16x128xf32>
    %c0_5 = arith.constant 0 : index
    %c0_6 = arith.constant 0 : index
    %12 = vector.load %arg2[%c0_5, %c0_6] : memref<1x128xf32, #tpu.memory_space<vmem>>, vector<1x128xf32>
    %13 = vector.broadcast %12 : vector<1x128xf32> to vector<16x128xf32>
    %14 = arith.mulf %11, %13 : vector<16x128xf32>
    %c0_7 = arith.constant 0 : index
    %c0_8 = arith.constant 0 : index
    %15 = vector.load %arg3[%c0_7, %c0_8] : memref<16x128xf32, #tpu.memory_space<vmem>>, vector<16x128xf32>
    tpu.vector_store %arg3[%c0_7, %c0_8], %14 {strides = array<i32>} : memref<16x128xf32, #tpu.memory_space<vmem>>, vector<16x128xf32>,
    return
  }
  func.func @transform_0(%arg0: i32) -> (i32, i32) {
    %c0_i32 = arith.constant 0 : i32
    %c0_i32_0 = arith.constant 0 : i32
    return %arg0, %c0_i32 : i32, i32
  }
  func.func @transform_1(%arg0: i32) -> (i32, i32) {
    %c0_i32 = arith.constant 0 : i32
    %c0_i32_0 = arith.constant 0 : i32
    %c0_i32_1 = arith.constant 0 : i32
    return %c0_i32, %c0_i32_0 : i32, i32
  }
  func.func @transform_2(%arg0: i32) -> (i32, i32) {
    %c0_i32 = arith.constant 0 : i32
    %c0_i32_0 = arith.constant 0 : i32
    return %arg0, %c0_i32 : i32, i32
  }
}

</mosaic_0001>

<bundles_post_ra>
// kernel: tpu_custom_call.1
= control target key start
LH: loop header
LB: loop body
LE: loop exit
PB: predicated region body
PF: predicated region fallthrough
CT: control target
= control target key end

     0   :  { %7 = vsyncpa [#allocation3], 0  ;;  %s179_s0 = inlined_call_operand.hbm [shape: f32[16,128], index: 0, kind: input, shape index: {}]   ;;  %s180_s1 = inlined_call_operand.vmem [shape: f32[1,128], index: 1, kind: input, shape index: {}]   ;;  %s181_s2 = inlined_call_operand.hbm [shape: f32[16,128], index: 2, kind: output, shape index: {}]  }
   0x1   :  { %8 = vsyncpa [#allocation4], 0  ;;  %s127_s9 = smov [#allocation2]   ;;  %s79_s13 = scalar_lea.hbm %s179_s0, 256 }
   0x2   :  { %s14_s10 = sshll.u32 %s127_s9, 4  ;;  %p80_p0 = scmp.ne.s32.totalorder %s179_s0, %s79_s13  ;;  %s15_s10 = int_to_ptr.vmem [resolvable:$true] %s14_s10 }
   0x3   :  { %p83_p1 = scmp.lt.u32.totalorder %s79_s13, %s179_s0 }
   0x5   :  { %p85_p2 = pnand %p83_p1, %p80_p0 }
   0x7   :  { %88 = shalt.err (!%p85_p2)
}
   0x8   :  { %s89_s18 = scalar_lea.vmem %s15_s10, 256  ;;  %p94_p4 = scmp.lt.s32.totalorder %s15_s10, %s15_s10 }
   0x9   :  { %p90_p3 = scmp.ne.s32.totalorder %s15_s10, %s89_s18  ;;  %p95_p5 = scmp.lt.s32.totalorder %s89_s18, %s89_s18 }
   0xb   :  { %p96_p6 = por %p95_p5, %p94_p4 }
   0xd   :  { %p97_p7 = pnand %p96_p6, %p90_p3 }
   0xf   :  { %100 = shalt.err (!%p97_p7)
}
  0x10   :  { %s128_s19 = smov 128   ;;  %s129_s20 = smov 8  }
  0x11   :  { %20 = dma.hbm_to_vmem [thread:$0]  %s179_s0, 256, %s15_s10, [#allocation3], %s128_s19, %s128_s19, %s129_s20  }
  0x12   :  { %123 = dma.done.wait [#allocation3], 256  }
  0x13   :  { %124 = vsyncadd [#allocation3], 4294967040  ;;  %v26_v0 = vld [vmem:[#allocation2] sm:$0xff]  ;;  %v27_v1 = vld [vmem:[#allocation2 + $0x8] sm:$0xff]  ;;  %s130_s0 = smov [#allocation5]  }
  0x14   :  { %v28_v2 = vmul.f32 %v26_v0, %v26_v0  ;;  %v29_v3 = vmul.f32 %v27_v1, %v27_v1  ;;  %v70_v11 = vld [vmem:[%s180_s1] ss:$0 sm:$0xff]  ;;  %s58_s25 = sshll.u32 %s130_s0, 4  ;;  %s59_s25 = int_to_ptr.vmem [resolvable:$true] %s58_s25 }
  0x15   :  { %s101_s26 = scalar_lea.vmem %s59_s25, 256  ;;  %p106_p9 = scmp.lt.s32.totalorder %s59_s25, %s59_s25 }
  0x16   :  { %30 = vadd.xlane.f32.xlu0 %v28_v2  ;;  %p102_p8 = scmp.ne.s32.totalorder %s59_s25, %s101_s26  ;;  %p107_p10 = scmp.lt.s32.totalorder %s101_s26, %s101_s26 }
  0x18   :  { %p108_p11 = por %p107_p10, %p106_p9 }
  0x1a   :  { %32 = vadd.xlane.f32.xlu0 %v29_v3  ;;  %p109_p12 = pnand %p108_p11, %p102_p8 }
  0xa3   :  { %v31_v4 = vpop.xlane.xlu0 %30 }
  0xa4   :  { %v34_v5 = vmul.f32 0.0078125, %v31_v4 }
  0xa6   :  { %v36_v6 = vadd.f32 1e-06, %v34_v5 }
  0xa7   :  { %v33_v7 = vpop.xlane.xlu0 %32 }
  0xa8   :  { %75 = vrsqrt.f32 %v36_v6  ;;  %v35_v8 = vmul.f32 0.0078125, %v33_v7 }
  0xaa   :  { %v37_v9 = vadd.f32 1e-06, %v35_v8 }
  0xac   :  { %77 = vrsqrt.f32 %v37_v9 }
  0xb2   :  { %v76_v10 = vpop.eup %75 }
  0xb3   :  { %v40_v12 = vmul.f32 %v76_v10, %v26_v0 }
  0xb5   :  { %v49_v13 = vmul.f32 %v70_v11, %v40_v12 }
  0xb6   :  { %v78_v14 = vpop.eup %77 }
  0xb7   :  { %v41_v15 = vmul.f32 %v78_v14, %v27_v1  ;;  %51 = vst [vmem:[#allocation5] sm:$0xff] %v49_v13 }
  0xb9   :  { %v50_v16 = vmul.f32 %v70_v11, %v41_v15 }
  0xbb   :  { %52 = vst [vmem:[#allocation5 + $0x8] sm:$0xff] %v50_v16 }
  0xbc   :  { %112 = shalt.err (!%p109_p12)
}
  0xbd   :  { %s113_s1 = scalar_lea.hbm %s181_s2, 256 }
  0xbe   :  { %p114_p13 = scmp.ne.s32.totalorder %s181_s2, %s113_s1  ;;  %p117_p0 = scmp.lt.u32.totalorder %s113_s1, %s181_s2 }
  0xc0   :  { %p119_p1 = pnand %p117_p0, %p114_p13 }
  0xc2   :  { %122 = shalt.err (!%p119_p1)
}
  0xc3   :  { %64 = dma.vmem_to_hbm [thread:$0]  %s59_s25, 256, %s181_s2, [#allocation4], %s128_s19, %s128_s19, %s129_s20  }
  0xc4   :  { %125 = dma.done.wait [#allocation4], 256  }
  0xc5   :  { %126 = vsyncadd [#allocation4], 4294967040 }
  0xc6   :  { %68 = vsyncpa [#allocation3], 1 }
  0xc7   :  { %69 = vsyncpa [#allocation4], 1 }

</bundles_post_ra>
